<compile_context>
chip_gen: v6e
topology: v6e:2x2x1
jax: 0.10.0
libtpu: 0.0.40
codegen_flags: <defaults>
</compile_context>

<pallas_src>
import functools

import jax
import jax.numpy as jnp
from jax.experimental import pallas as pl
from jax.experimental.pallas import tpu as pltpu


def _round_up(x, m):
    return ((x + m - 1) // m) * m


def _largest_divisor_leq(n, cap):
    """Largest divisor of n that is <= cap (always >= 1)."""
    cap = max(int(cap), 1)
    best = 1
    d = 1
    while d * d <= n:
        if n % d == 0:
            q = n // d
            if d <= cap and d > best:
                best = d
            if q <= cap and q > best:
                best = q
        d += 1
    return best


# ---------------------------------------------------------------------------
# Kernels
# ---------------------------------------------------------------------------

def _zeroshot_fused_kernel(x_ref, w1_ref, b1_ref, w2_ref, b2_ref, zs_ref, out_ref,
                           *, norm_weight, norm_temperature):
    # 1-D grid over M tiles; the whole (padded) N axis is one tile.
    # x_ref:  (TILE_M, D_in_p)   bf16   (tile i)
    # w1_ref: (D_in_p, D_h_p)    bf16   (resident)
    # b1_ref: (1, D_h_p)         f32    (resident)
    # w2_ref: (D_h_p, D_zs_p)    bf16   (resident)
    # b2_ref: (1, D_zs_p)        f32    (resident)
    # zs_ref: (D_zs_p, N_pad)    bf16   (resident, pre-transposed)
    # out_ref:(TILE_M, N_pad)
    h = jnp.dot(x_ref[...], w1_ref[...], preferred_element_type=jnp.float32)
    h = jnp.maximum(h + b1_ref[...], 0.0)
    y = jnp.dot(h.astype(jnp.bfloat16), w2_ref[...],
                preferred_element_type=jnp.float32)
    y = y + b2_ref[...]
    if norm_weight:
        # norm_temperature * F.normalize(y): fold temperature into one
        # rsqrt-based scale (EUP rsqrt + single VPU multiply).
        sq = jnp.sum(y * y, axis=-1, keepdims=True)
        y = y * (norm_temperature * jax.lax.rsqrt(jnp.maximum(sq, 1e-24)))
    out_ref[...] = jnp.dot(y.astype(jnp.bfloat16), zs_ref[...],
                           preferred_element_type=jnp.float32).astype(out_ref.dtype)


def _zeroshot_tiled_kernel(x_ref, w1_ref, b1_ref, w2_ref, b2_ref, zs_ref, out_ref,
                           y_scratch, *, norm_weight, norm_temperature):
    # 2-D grid (i over M tiles, j over N tiles) for very large class counts.
    # The MLP + normalize for an M tile is computed once at j == 0 into VMEM
    # scratch and reused for every N tile.
    # NOTE: correctness relies on j being the innermost, sequential ("arbitrary")
    # grid axis; do not reorder the grid or mark j parallel/core_parallel.
    j = pl.program_id(1)

    @pl.when(j == 0)
    def _compute_mlp():
        h = jnp.dot(x_ref[...], w1_ref[...], preferred_element_type=jnp.float32)
        h = jnp.maximum(h + b1_ref[...], 0.0)
        y = jnp.dot(h.astype(jnp.bfloat16), w2_ref[...],
                    preferred_element_type=jnp.float32)
        y = y + b2_ref[...]
        if norm_weight:
            sq = jnp.sum(y * y, axis=-1, keepdims=True)
            y = y * (norm_temperature * jax.lax.rsqrt(jnp.maximum(sq, 1e-24)))
        y_scratch[...] = y.astype(jnp.bfloat16)

    # logits tile: (TILE_M, D_zs_p) @ (D_zs_p, TILE_N) -> lane-dense output.
    out_ref[...] = jnp.dot(y_scratch[...], zs_ref[...],
                           preferred_element_type=jnp.float32).astype(out_ref.dtype)


# ---------------------------------------------------------------------------
# Wrapper
# ---------------------------------------------------------------------------

def zeroshot_classifier_forward(x, params, zs_weight, *,
                                norm_weight=True, norm_temperature=50.0,
                                out_dtype=jnp.float32,
                                max_tile_m=512, max_tile_n=2048,
                                vmem_budget_bytes=24 * 1024 * 1024,
                                return_padded_2d=False):
    """x: (B, Q, D_in) float32.  zs_weight: (N, D_zs) text features, already
    including the appended zero row.  Returns logits (B, Q, N) in out_dtype,
    or the padded (M_pad, N_pad) slab if return_padded_2d=True."""
    B, Q, D_in = x.shape
    w1, b1, w2, b2 = params
    D_h = w1.shape[1]
    D_zs = w2.shape[1]
    N = zs_weight.shape[0]
    M = B * Q

    # --- Pad contraction / feature dims to the 128-lane width.  Zero padding
    # of x columns / w1 rows / w1 cols + b1 / w2 rows / w2 cols + b2 / zs rows
    # is numerically free (padded y columns are exactly zero, so the L2 norm
    # and the class matmul are unchanged).
    D_in_p = _round_up(D_in, 128)
    D_h_p = _round_up(D_h, 128)
    D_zs_p = _round_up(D_zs, 128)

    # --- Tight output padding: N_pad is exactly round_up(N, 128); tile_n will
    # be a 128-multiple divisor of N_pad so no extra columns are computed.
    N_pad = _round_up(N, 128)
    n_blocks = N_pad // 128

    # --- M tile: multiples of 16 (bf16 sublane packing).  Small problems use a
    # single M tile (tile_m == M_pad), collapsing the grid.
    M_pad16 = _round_up(M, 16)
    if M_pad16 <= max_tile_m:
        tile_m = M_pad16
    else:
        cap = max(max_tile_m, 16)
        cands = [c for c in (512, 384, 256, 192, 128, 64, 32, 16) if c <= cap]
        tile_m = min(cands, key=lambda c: (_round_up(M, c), -c))
    M_pad = _round_up(M, tile_m)

    out_bytes = jnp.dtype(out_dtype).itemsize

    # --- VMEM accounting (bytes); pipelined operands double-buffered (x2).
    weights_bytes = 2 * (D_in_p * D_h_p * 2 + D_h_p * D_zs_p * 2
                         + D_h_p * 4 + D_zs_p * 4)
    x_tile_bytes = 2 * tile_m * D_in_p * 2
    inter_bytes = tile_m * D_h_p * 4 + tile_m * D_zs_p * 4      # h, y f32 temps
    fixed_bytes = weights_bytes + x_tile_bytes + inter_bytes
    per_n_block_bytes = 2 * D_zs_p * 128 * 2 + 2 * tile_m * 128 * out_bytes

    avail = max(vmem_budget_bytes - fixed_bytes, per_n_block_bytes)
    max_blocks = min(avail // per_n_block_bytes, max(max_tile_n // 128, 1))
    tile_n_blocks = _largest_divisor_leq(n_blocks, max_blocks)
    tile_n = 128 * tile_n_blocks
    fused = tile_n_blocks == n_blocks        # whole N axis in one tile -> 1-D grid

    footprint = (fixed_bytes + tile_n_blocks * per_n_block_bytes
                 + (0 if fused else tile_m * D_zs_p * 2))
    vmem_limit = int(min(max(int(footprint * 1.5) + (4 << 20), 16 << 20), 48 << 20))

    # --- Operand prep (bf16 matmul operands, f32 biases, zero padding).
    x2d = x.reshape(M, D_in).astype(jnp.bfloat16)
    x2d = jnp.pad(x2d, ((0, M_pad - M), (0, D_in_p - D_in)))
    w1_b = jnp.pad(w1.astype(jnp.bfloat16), ((0, D_in_p - D_in), (0, D_h_p - D_h)))
    w2_b = jnp.pad(w2.astype(jnp.bfloat16), ((0, D_h_p - D_h), (0, D_zs_p - D_zs)))
    b1_2d = jnp.pad(b1.reshape(1, D_h).astype(jnp.float32),
                    ((0, 0), (0, D_h_p - D_h)))
    b2_2d = jnp.pad(b2.reshape(1, D_zs).astype(jnp.float32),
                    ((0, 0), (0, D_zs_p - D_zs)))
    zs_t = jnp.pad(zs_weight.T.astype(jnp.bfloat16),
                   ((0, D_zs_p - D_zs), (0, N_pad - N)))

    if fused:
        kernel = functools.partial(
            _zeroshot_fused_kernel,
            norm_weight=bool(norm_weight),
            norm_temperature=float(norm_temperature))
        grid = (M_pad // tile_m,)
        in_specs = [
            pl.BlockSpec((tile_m, D_in_p), lambda i: (i, 0)),    # x tile
            pl.BlockSpec((D_in_p, D_h_p), lambda i: (0, 0)),     # w1 resident
            pl.BlockSpec((1, D_h_p), lambda i: (0, 0)),          # b1 resident
            pl.BlockSpec((D_h_p, D_zs_p), lambda i: (0, 0)),     # w2 resident
            pl.BlockSpec((1, D_zs_p), lambda i: (0, 0)),         # b2 resident
            pl.BlockSpec((D_zs_p, N_pad), lambda i: (0, 0)),     # zs^T resident
        ]
        out_specs = pl.BlockSpec((tile_m, N_pad), lambda i: (i, 0))
        scratch_shapes = []
        dim_sem = ("parallel",)
    else:
        kernel = functools.partial(
            _zeroshot_tiled_kernel,
            norm_weight=bool(norm_weight),
            norm_temperature=float(norm_temperature))
        grid = (M_pad // tile_m, N_pad // tile_n)
        in_specs = [
            pl.BlockSpec((tile_m, D_in_p), lambda i, j: (i, 0)),
            pl.BlockSpec((D_in_p, D_h_p), lambda i, j: (0, 0)),
            pl.BlockSpec((1, D_h_p), lambda i, j: (0, 0)),
            pl.BlockSpec((D_h_p, D_zs_p), lambda i, j: (0, 0)),
            pl.BlockSpec((1, D_zs_p), lambda i, j: (0, 0)),
            pl.BlockSpec((D_zs_p, tile_n), lambda i, j: (0, j)),
        ]
        out_specs = pl.BlockSpec((tile_m, tile_n), lambda i, j: (i, j))
        scratch_shapes = [pltpu.VMEM((tile_m, D_zs_p), jnp.bfloat16)]
        # i tiles independent (megacore sharding); j carries y_scratch, so it
        # must stay the sequential innermost axis.
        dim_sem = ("parallel", "arbitrary")

    out = pl.pallas_call(
        kernel,
        out_shape=jax.ShapeDtypeStruct((M_pad, N_pad), out_dtype),
        grid_spec=pltpu.PrefetchScalarGridSpec(
            num_scalar_prefetch=0,
            grid=grid,
            in_specs=in_specs,
            out_specs=out_specs,
            scratch_shapes=scratch_shapes,
        ),
        compiler_params=pltpu.CompilerParams(
            dimension_semantics=dim_sem,
            vmem_limit_bytes=vmem_limit,
        ),
    )(x2d, w1_b, b1_2d, w2_b, b2_2d, zs_t)

    if return_padded_2d:
        return out
    if M_pad == M and N_pad == N:
        return out.reshape(B, Q, N)
    # TODO(synk): for large class counts the consumer could accept the padded
    # (M_pad, N_pad) slab (return_padded_2d=True) to skip this extra HBM copy.
    return out[:M, :N].reshape(B, Q, N)


# ---------------------------------------------------------------------------
# Pure-JAX reference + deterministic setup
# ---------------------------------------------------------------------------

def _reference_forward(x, params, zs_weight, *, norm_weight=True,
                       norm_temperature=50.0):
    w1, b1, w2, b2 = params
    B, Q, D_in = x.shape
    y = jnp.maximum(x.reshape(-1, D_in) @ w1 + b1, 0.0) @ w2 + b2
    if norm_weight:
        nrm = jnp.maximum(jnp.linalg.norm(y, axis=-1, keepdims=True), 1e-12)
        y = norm_temperature * y / nrm
    return (y @ zs_weight.T).reshape(B, Q, -1)


def init_params(key, d_in, zs_weight_dim):
    """Deterministic init of the MLP: Linear(d_in, zs//2) -> ReLU -> Linear(zs//2, zs)."""
    d_h = zs_weight_dim // 2
    k1, k2, k3, k4 = jax.random.split(key, 4)
    lim1 = 1.0 / (d_in ** 0.5)
    lim2 = 1.0 / (d_h ** 0.5)
    w1 = jax.random.uniform(k1, (d_in, d_h), jnp.float32, -lim1, lim1)
    b1 = jax.random.uniform(k2, (d_h,), jnp.float32, -lim1, lim1)
    w2 = jax.random.uniform(k3, (d_h, zs_weight_dim), jnp.float32, -lim2, lim2)
    b2 = jax.random.uniform(k4, (zs_weight_dim,), jnp.float32, -lim2, lim2)
    return w1, b1, w2, b2


def synthetic_text_features(key, num_classes, zs_weight_dim):
    # TODO(synk): frame_clip_adapter.get_text_features(texts) runs a CLIP text
    # encoder; here we substitute deterministic synthetic unit-norm features.
    feats = jax.random.normal(key, (num_classes, zs_weight_dim), jnp.float32)
    feats = feats / jnp.linalg.norm(feats, axis=-1, keepdims=True)
    # torch.cat([zs_weight, torch.zeros_like(zs_weight)[0:1]])
    return jnp.concatenate([feats, jnp.zeros((1, zs_weight_dim), jnp.float32)], axis=0)


if __name__ == "__main__":
    key = jax.random.PRNGKey(0)
    kx, kp, kt = jax.random.split(key, 3)

    # Small shapes consistent with the forward: x is B x Q x D_in (query features)
    B, Q, D_in = 2, 8, 32
    ZS_DIM = 64
    NUM_CLASSES = 7  # -> zs_weight has N = 8 rows after the appended zero row

    x = jax.random.normal(kx, (B, Q, D_in), jnp.float32)
    params = init_params(kp, D_in, ZS_DIM)
    zs_weight = synthetic_text_features(kt, NUM_CLASSES, ZS_DIM)

    logits = zeroshot_classifier_forward(
        x, params, zs_weight, norm_weight=True, norm_temperature=50.0)
    jax.block_until_ready(logits)

    assert logits.shape == (B, Q, NUM_CLASSES + 1)

    # Correctness vs pure-JAX f32 reference (bf16 matmul operands -> loose tol;
    # logits are bounded by norm_temperature so abs error is the right metric).
    ref = _reference_forward(x, params, zs_weight,
                             norm_weight=True, norm_temperature=50.0)
    max_err = float(jnp.max(jnp.abs(logits - ref)))
    assert max_err < 2.0, f"logits mismatch: max abs err {max_err}"

    print("KERNEL_OK")
</pallas_src>

<mosaic_0001>
module attributes {stable_mosaic.version = 11 : i64} {
  func.func @_zeroshot_fused_kernel(%arg0: i32, %arg1: memref<16x128xbf16, #tpu.memory_space<vmem>>, %arg2: memref<128x128xbf16, #tpu.memory_space<vmem>>, %arg3: memref<1x128xf32, #tpu.memory_space<vmem>>, %arg4: memref<128x128xbf16, #tpu.memory_space<vmem>>, %arg5: memref<1x128xf32, #tpu.memory_space<vmem>>, %arg6: memref<128x128xbf16, #tpu.memory_space<vmem>>, %arg7: memref<16x128xf32, #tpu.memory_space<vmem>>) attributes {dimension_semantics = [#tpu.dimension_semantics<parallel>], iteration_bounds = array<i64: 1>, scalar_prefetch = 0 : i64, scratch_operands = 0 : i64, tpu.core_type = #tpu.core_type<tc>, window_params = [{transform_indices = @transform_0, window_bounds = array<i64: 16, 128>}, {pipeline_mode = #tpu.pipeline_mode<synchronous>, transform_indices = @transform_1, window_bounds = array<i64: 128, 128>}, {pipeline_mode = #tpu.pipeline_mode<synchronous>, transform_indices = @transform_2, window_bounds = array<i64: 1, 128>}, {pipeline_mode = #tpu.pipeline_mode<synchronous>, transform_indices = @transform_3, window_bounds = array<i64: 128, 128>}, {pipeline_mode = #tpu.pipeline_mode<synchronous>, transform_indices = @transform_4, window_bounds = array<i64: 1, 128>}, {pipeline_mode = #tpu.pipeline_mode<synchronous>, transform_indices = @transform_5, window_bounds = array<i64: 128, 128>}, {transform_indices = @transform_6, window_bounds = array<i64: 16, 128>}]} {
    %c0 = arith.constant 0 : index
    %c0_0 = arith.constant 0 : index
    %0 = vector.load %arg1[%c0, %c0_0] : memref<16x128xbf16, #tpu.memory_space<vmem>>, vector<16x128xbf16>
    %c0_1 = arith.constant 0 : index
    %c0_2 = arith.constant 0 : index
    %1 = vector.load %arg2[%c0_1, %c0_2] : memref<128x128xbf16, #tpu.memory_space<vmem>>, vector<128x128xbf16>
    %cst = arith.constant dense<0.000000e+00> : vector<16x128xf32>
    %2 = tpu.matmul %0, %1, %cst {dimension_numbers = #tpu.dot_dimension_numbers<[1], [0], [0], [1], [0, 0, 1, 1], [], []>} : vector<16x128xbf16>, vector<128x128xbf16>, vector<16x128xf32> -> vector<16x128xf32>
    %c0_3 = arith.constant 0 : index
    %c0_4 = arith.constant 0 : index
    %3 = vector.load %arg3[%c0_3, %c0_4] : memref<1x128xf32, #tpu.memory_space<vmem>>, vector<1x128xf32>
    %4 = vector.broadcast %3 : vector<1x128xf32> to vector<16x128xf32>
    %5 = arith.addf %2, %4 : vector<16x128xf32>
    %cst_5 = arith.constant 0.000000e+00 : f32
    %6 = vector.broadcast %cst_5 : f32 to vector<16x128xf32>
    %7 = arith.maximumf %5, %6 : vector<16x128xf32>
    %8 = arith.truncf %7 : vector<16x128xf32> to vector<16x128xbf16>
    %c0_6 = arith.constant 0 : index
    %c0_7 = arith.constant 0 : index
    %9 = vector.load %arg4[%c0_6, %c0_7] : memref<128x128xbf16, #tpu.memory_space<vmem>>, vector<128x128xbf16>
    %cst_8 = arith.constant dense<0.000000e+00> : vector<16x128xf32>
    %10 = tpu.matmul %8, %9, %cst_8 {dimension_numbers = #tpu.dot_dimension_numbers<[1], [0], [0], [1], [0, 0, 1, 1], [], []>} : vector<16x128xbf16>, vector<128x128xbf16>, vector<16x128xf32> -> vector<16x128xf32>
    %c0_9 = arith.constant 0 : index
    %c0_10 = arith.constant 0 : index
    %11 = vector.load %arg5[%c0_9, %c0_10] : memref<1x128xf32, #tpu.memory_space<vmem>>, vector<1x128xf32>
    %12 = vector.broadcast %11 : vector<1x128xf32> to vector<16x128xf32>
    %13 = arith.addf %10, %12 : vector<16x128xf32>
    %14 = arith.mulf %13, %13 : vector<16x128xf32>
    %cst_11 = arith.constant dense<0.000000e+00> : vector<16xf32>
    %15 = vector.multi_reduction <add>, %14, %cst_11 [1] : vector<16x128xf32> to vector<16xf32>
    %16 = vector.shape_cast %15 : vector<16xf32> to vector<16x1xf32>
    %cst_12 = arith.constant 1.000000e-24 : f32
    %17 = vector.broadcast %cst_12 : f32 to vector<16x1xf32>
    %18 = arith.maximumf %16, %17 : vector<16x1xf32>
    %19 = math.rsqrt %18 : vector<16x1xf32>
    %cst_13 = arith.constant 5.000000e+01 : f32
    %20 = vector.broadcast %cst_13 : f32 to vector<16x1xf32>
    %21 = arith.mulf %20, %19 : vector<16x1xf32>
    %22 = vector.broadcast %21 : vector<16x1xf32> to vector<16x128xf32>
    %23 = arith.mulf %13, %22 : vector<16x128xf32>
    %24 = arith.truncf %23 : vector<16x128xf32> to vector<16x128xbf16>
    %c0_14 = arith.constant 0 : index
    %c0_15 = arith.constant 0 : index
    %25 = vector.load %arg6[%c0_14, %c0_15] : memref<128x128xbf16, #tpu.memory_space<vmem>>, vector<128x128xbf16>
    %cst_16 = arith.constant dense<0.000000e+00> : vector<16x128xf32>
    %26 = tpu.matmul %24, %25, %cst_16 {dimension_numbers = #tpu.dot_dimension_numbers<[1], [0], [0], [1], [0, 0, 1, 1], [], []>} : vector<16x128xbf16>, vector<128x128xbf16>, vector<16x128xf32> -> vector<16x128xf32>
    %c0_17 = arith.constant 0 : index
    %c0_18 = arith.constant 0 : index
    %27 = vector.load %arg7[%c0_17, %c0_18] : memref<16x128xf32, #tpu.memory_space<vmem>>, vector<16x128xf32>
    tpu.vector_store %arg7[%c0_17, %c0_18], %26 {strides = array<i32>} : memref<16x128xf32, #tpu.memory_space<vmem>>, vector<16x128xf32>,
    return
  }
  func.func @transform_0(%arg0: i32) -> (i32, i32) {
    %c0_i32 = arith.constant 0 : i32
    %c0_i32_0 = arith.constant 0 : i32
    return %arg0, %c0_i32 : i32, i32
  }
  func.func @transform_1(%arg0: i32) -> (i32, i32) {
    %c0_i32 = arith.constant 0 : i32
    %c0_i32_0 = arith.constant 0 : i32
    %c0_i32_1 = arith.constant 0 : i32
    return %c0_i32, %c0_i32_0 : i32, i32
  }
  func.func @transform_2(%arg0: i32) -> (i32, i32) {
    %c0_i32 = arith.constant 0 : i32
    %c0_i32_0 = arith.constant 0 : i32
    %c0_i32_1 = arith.constant 0 : i32
    return %c0_i32, %c0_i32_0 : i32, i32
  }
  func.func @transform_3(%arg0: i32) -> (i32, i32) {
    %c0_i32 = arith.constant 0 : i32
    %c0_i32_0 = arith.constant 0 : i32
    %c0_i32_1 = arith.constant 0 : i32
    return %c0_i32, %c0_i32_0 : i32, i32
  }
  func.func @transform_4(%arg0: i32) -> (i32, i32) {
    %c0_i32 = arith.constant 0 : i32
    %c0_i32_0 = arith.constant 0 : i32
    %c0_i32_1 = arith.constant 0 : i32
    return %c0_i32, %c0_i32_0 : i32, i32
  }
  func.func @transform_5(%arg0: i32) -> (i32, i32) {
    %c0_i32 = arith.constant 0 : i32
    %c0_i32_0 = arith.constant 0 : i32
    %c0_i32_1 = arith.constant 0 : i32
    return %c0_i32, %c0_i32_0 : i32, i32
  }
  func.func @transform_6(%arg0: i32) -> (i32, i32) {
    %c0_i32 = arith.constant 0 : i32
    %c0_i32_0 = arith.constant 0 : i32
    return %arg0, %c0_i32 : i32, i32
  }
}

</mosaic_0001>

<bundles_post_ra>
// kernel: tpu_custom_call.1
= control target key start
LH: loop header
LB: loop body
LE: loop exit
PB: predicated region body
PF: predicated region fallthrough
CT: control target
= control target key end

     0   :  { %11 = vsyncpa [#allocation3], 0  ;;  %s827_s0 = inlined_call_operand.hbm [shape: bf16[16,128], index: 0, kind: input, shape index: {}]   ;;  %s828_s1 = inlined_call_operand.hbm [shape: bf16[128,128], index: 1, kind: input, shape index: {}]   ;;  %s829_s2 = inlined_call_operand.vmem [shape: f32[1,128], index: 2, kind: input, shape index: {}]   ;;  %s830_s3 = inlined_call_operand.hbm [shape: bf16[128,128], index: 3, kind: input, shape index: {}]   ;;  %s831_s4 = inlined_call_operand.vmem [shape: f32[1,128], index: 4, kind: input, shape index: {}]   ;;  %s832_s5 = inlined_call_operand.hbm [shape: bf16[128,128], index: 5, kind: input, shape index: {}]   ;;  %s833_s6 = inlined_call_operand.hbm [shape: f32[16,128], index: 6, kind: output, shape index: {}]  }
   0x1   :  { %12 = vsyncpa [#allocation6], 0 }
   0x2   :  { %13 = vsyncpa [#allocation9], 0 }
   0x3   :  { %14 = vsyncpa [#allocation4], 0  ;;  %s718_s21 = smov [#allocation5]   ;;  %s719_s23 = smov [#allocation2]  }
   0x4   :  { %s32_s22 = sshll.u32 %s718_s21, 4  ;;  %s20_s24 = sshll.u32 %s719_s23, 4  ;;  %s33_s22 = int_to_ptr.vmem [resolvable:$true] %s32_s22  ;;  %s21_s24 = int_to_ptr.vmem [resolvable:$true] %s20_s24 }
   0x5   :  { %s618_s25 = scalar_lea.vmem %s33_s22, 1024  ;;  %p623_p1 = scmp.lt.s32.totalorder %s33_s22, %s33_s22 }
   0x6   :  { %p619_p0 = scmp.ne.s32.totalorder %s33_s22, %s618_s25  ;;  %p624_p2 = scmp.lt.s32.totalorder %s618_s25, %s618_s25 }
   0x8   :  { %p625_p3 = por %p624_p2, %p623_p1 }
   0xa   :  { %p626_p4 = pnand %p625_p3, %p619_p0 }
   0xc   :  { %629 = shalt.err (!%p626_p4)
}
   0xd   :  { %s720_s26 = smov 64   ;;  %s721_s27 = smov 4  }
   0xe   :  { %38 = dma.hbm_to_vmem [thread:$0]  %s828_s1, 1024, %s33_s22, [#allocation6], %s720_s26, %s720_s26, %s721_s27  }
   0xf   :  { %s638_s30 = scalar_lea.vmem %s21_s24, 128  ;;  %p643_p6 = scmp.lt.s32.totalorder %s21_s24, %s21_s24 }
  0x10   :  { %p639_p5 = scmp.ne.s32.totalorder %s21_s24, %s638_s30  ;;  %p644_p7 = scmp.lt.s32.totalorder %s638_s30, %s638_s30 }
  0x12   :  { %p645_p8 = por %p644_p7, %p643_p6 }
  0x14   :  { %p646_p9 = pnand %p645_p8, %p639_p5 }
  0x16   :  { %649 = shalt.err (!%p646_p9)
}
  0x17   :  { %26 = dma.hbm_to_vmem [thread:$0]  %s827_s0, 128, %s21_s24, [#allocation3], %s720_s26, %s720_s26, %s721_s27  }
  0x18   :  { %s722_s9 = smov [#allocation7]   ;;  %s723_s11 = smov [#allocation8]  }
  0x19   :  { %s46_s10 = sshll.u32 %s722_s9, 4  ;;  %s60_s12 = sshll.u32 %s723_s11, 4  ;;  %s47_s10 = int_to_ptr.vmem [resolvable:$true] %s46_s10  ;;  %s61_s12 = int_to_ptr.vmem [resolvable:$true] %s60_s12 }
  0x1a   :  { %s658_s1 = scalar_lea.vmem %s47_s10, 1024  ;;  %p663_p11 = scmp.lt.s32.totalorder %s47_s10, %s47_s10 }
  0x1b   :  { %p659_p10 = scmp.ne.s32.totalorder %s47_s10, %s658_s1  ;;  %p664_p12 = scmp.lt.s32.totalorder %s658_s1, %s658_s1 }
  0x1d   :  { %p665_p13 = por %p664_p12, %p663_p11 }
  0x1f   :  { %p666_p0 = pnand %p665_p13, %p659_p10 }
  0x21   :  { %669 = shalt.err (!%p666_p0)
}
  0x22   :  { %52 = dma.hbm_to_vmem [thread:$0]  %s830_s3, 1024, %s47_s10, [#allocation6], %s720_s26, %s720_s26, %s721_s27  }
  0x23   :  { %s678_s0 = scalar_lea.vmem %s61_s12, 1024  ;;  %p683_p2 = scmp.lt.s32.totalorder %s61_s12, %s61_s12 }
  0x24   :  { %p679_p1 = scmp.ne.s32.totalorder %s61_s12, %s678_s0  ;;  %p684_p3 = scmp.lt.s32.totalorder %s678_s0, %s678_s0 }
  0x26   :  { %p685_p4 = por %p684_p3, %p683_p2 }
  0x28   :  { %p686_p5 = pnand %p685_p4, %p679_p1 }
  0x2a   :  { %689 = shalt.err (!%p686_p5)
}
  0x2b   :  { %66 = dma.hbm_to_vmem [thread:$0]  %s832_s5, 1024, %s61_s12, [#allocation9], %s720_s26, %s720_s26, %s721_s27  }
  0x2c   :  { %710 = dma.done.wait [#allocation3], 128  }
  0x2d   :  { %711 = vsyncadd [#allocation3], 4294967168 }
  0x2e   :  { %712 = dma.done.wait [#allocation6], 2048  }
  0x2f   :  { %713 = vsyncadd [#allocation6], 4294965248 }
  0x30   :  { %714 = dma.done.wait [#allocation9], 1024  }
  0x31   :  { %715 = vsyncadd [#allocation9], 4294966272  ;;  %v724_v0 = vmov 0.0   ;;  %vm725_vm0 = vmmov 0   ;;  %v581_v1 = vld [vmem:[#allocation5 + $0x38] sm:$0xff]   ;;  %v582_v2 = vld [vmem:[#allocation5 + $0x30] sm:$0xff]  }
  0x32   :  { %510 = vmatprep.subr.bf16.mxu0 %v724_v0  ;;  %526 = vmatprep.mubr.msk.bf16.mxu0 %vm725_vm0, %v724_v0  ;;  %v583_v3 = vld [vmem:[#allocation5 + $0x28] sm:$0xff]   ;;  %v590_v4 = vld [vmem:[#allocation7 + $0x38] sm:$0xff]   ;;  %v584_v5 = vld [vmem:[#allocation5 + $0x20] sm:$0xff]  }
  0x33   :  { %530 = vmatprep.subr.bf16.mxu1 %v724_v0  ;;  %546 = vmatprep.mubr.msk.bf16.mxu1 %vm725_vm0, %v724_v0  ;;  %v591_v6 = vld [vmem:[#allocation7 + $0x30] sm:$0xff]   ;;  %v585_v7 = vld [vmem:[#allocation5 + $0x18] sm:$0xff]   ;;  %v592_v8 = vld [vmem:[#allocation7 + $0x28] sm:$0xff]  }
  0x34   :  { %511 = vmatpush3.bf16.msra.mxu0 %v581_v1  ;;  %531 = vmatpush3.bf16.msra.mxu1 %v590_v4  ;;  %v586_v9 = vld [vmem:[#allocation5 + $0x10] sm:$0xff]   ;;  %v593_v10 = vld [vmem:[#allocation7 + $0x20] sm:$0xff]   ;;  %v587_v11 = vld [vmem:[#allocation5 + $0x8] sm:$0xff]  }
  0x35   :  { %512 = vmatprep.subr.bf16.mxu0 %v724_v0  ;;  %532 = vmatprep.subr.bf16.mxu1 %v724_v0  ;;  %v594_v12 = vld [vmem:[#allocation7 + $0x18] sm:$0xff]   ;;  %v588_v13 = vld [vmem:[#allocation5] sm:$0xff]   ;;  %v595_v15 = vld [vmem:[#allocation7 + $0x10] sm:$0xff]  }
  0x36   :  { %v589_v14 = vld [vmem:[#allocation2] sm:$0xff]   ;;  %v596_v16 = vld [vmem:[#allocation7 + $0x8] sm:$0xff]   ;;  %v597_v17 = vld [vmem:[#allocation7] sm:$0xff]  }
  0x37   :  { %v456_v18 = vld [vmem:[%s829_s2] ss:$0 sm:$0xff]  ;;  %v599_v29 = vld [vmem:[#allocation8 + $0x30] sm:$0xff]   ;;  %v600_v39 = vld [vmem:[#allocation8 + $0x28] sm:$0xff]  }
  0x38   :  { %513 = vmatpush3.bf16.msra.mxu0 %v582_v2  ;;  %533 = vmatpush3.bf16.msra.mxu1 %v591_v6  ;;  %v598_v28 = vld [vmem:[#allocation8 + $0x38] sm:$0xff]   ;;  %v601_v40 = vld [vmem:[#allocation8 + $0x20] sm:$0xff]   ;;  %v603_v42 = vld [vmem:[#allocation8 + $0x10] sm:$0xff]  }
  0x39   :  { %514 = vmatprep.subr.bf16.mxu0 %v724_v0  ;;  %534 = vmatprep.subr.bf16.mxu1 %v724_v0  ;;  %v466_v30 = vld [vmem:[%s831_s4] ss:$0 sm:$0xff]  ;;  %v604_v43 = vld [vmem:[#allocation8 + $0x8] sm:$0xff]   ;;  %v605_v44 = vld [vmem:[#allocation8] sm:$0xff]   ;;  %s726_s4 = smov [#allocation10]  }
  0x3a   :  { %v602_v41 = vld [vmem:[#allocation8 + $0x18] sm:$0xff]   ;;  %s442_s18 = sshll.u32 %s726_s4, 4  ;;  %s443_s18 = int_to_ptr.vmem [resolvable:$true] %s442_s18 }
  0x3b   :  { %s690_s19 = scalar_lea.vmem %s443_s18, 256  ;;  %p695_p7 = scmp.lt.s32.totalorder %s443_s18, %s443_s18 }
  0x3c   :  { %515 = vmatpush3.bf16.msra.mxu0 %v583_v3  ;;  %535 = vmatpush3.bf16.msra.mxu1 %v592_v8  ;;  %p691_p6 = scmp.ne.s32.totalorder %s443_s18, %s690_s19  ;;  %p696_p8 = scmp.lt.s32.totalorder %s690_s19, %s690_s19 }
  0x3d   :  { %516 = vmatprep.subr.bf16.mxu0 %v724_v0  ;;  %536 = vmatprep.subr.bf16.mxu1 %v724_v0 }
  0x3e   :  { %p697_p9 = por %p696_p8, %p695_p7 }
  0x40   :  { %517 = vmatpush3.bf16.msra.mxu0 %v584_v5  ;;  %537 = vmatpush3.bf16.msra.mxu1 %v593_v10  ;;  %p698_p10 = pnand %p697_p9, %p691_p6 }
  0x41   :  { %518 = vmatprep.subr.bf16.mxu0 %v724_v0  ;;  %538 = vmatprep.subr.bf16.mxu1 %v724_v0 }
  0x44   :  { %519 = vmatpush3.bf16.msra.mxu0 %v585_v7  ;;  %539 = vmatpush3.bf16.msra.mxu1 %v594_v12 }
  0x45   :  { %520 = vmatprep.subr.bf16.mxu0 %v724_v0  ;;  %540 = vmatprep.subr.bf16.mxu1 %v724_v0 }
  0x48   :  { %521 = vmatpush3.bf16.msra.mxu0 %v586_v9  ;;  %541 = vmatpush3.bf16.msra.mxu1 %v595_v15 }
  0x49   :  { %522 = vmatprep.subr.bf16.mxu0 %v724_v0  ;;  %542 = vmatprep.subr.bf16.mxu1 %v724_v0 }
  0x4c   :  { %523 = vmatpush3.bf16.msra.mxu0 %v587_v11  ;;  %543 = vmatpush3.bf16.msra.mxu1 %v596_v16 }
  0x4d   :  { %524 = vmatprep.subr.bf16.mxu0 %v724_v0  ;;  %544 = vmatprep.subr.bf16.mxu1 %v724_v0 }
  0x50   :  { %525 = vmatpush3.bf16.msra.mxu0 %v588_v13  ;;  %545 = vmatpush3.bf16.msra.mxu1 %v597_v17 }
  0x51   :  { %550 = vmatprep.subr.bf16.mxu0 %v724_v0 }
  0x53   :  { %527 = vmatmul.mubr.bf16.vlgmr.msra.gmra.mxu0 %v589_v14 }
  0x54   :  { %566 = vmatprep.mubr.msk.bf16.mxu0 %vm725_vm0, %v724_v0  ;;  %551 = vmatpush3.bf16.msra.mxu0 %v598_v28 }
  0x55   :  { %552 = vmatprep.subr.bf16.mxu0 %v724_v0 }
  0x58   :  { %553 = vmatpush3.bf16.msra.mxu0 %v599_v29 }
  0x59   :  { %554 = vmatprep.subr.bf16.mxu0 %v724_v0 }
  0x5c   :  { %555 = vmatpush3.bf16.msra.mxu0 %v600_v39 }
  0x5d   :  { %556 = vmatprep.subr.bf16.mxu0 %v724_v0 }
  0x60   :  { %557 = vmatpush3.bf16.msra.mxu0 %v601_v40 }
  0x61   :  { %558 = vmatprep.subr.bf16.mxu0 %v724_v0 }
  0x64   :  { %559 = vmatpush3.bf16.msra.mxu0 %v602_v41 }
  0x65   :  { %560 = vmatprep.subr.bf16.mxu0 %v724_v0 }
  0x68   :  { %561 = vmatpush3.bf16.msra.mxu0 %v603_v42 }
  0x69   :  { %562 = vmatprep.subr.bf16.mxu0 %v724_v0 }
  0x6c   :  { %563 = vmatpush3.bf16.msra.mxu0 %v604_v43 }
  0x6d   :  { %564 = vmatprep.subr.bf16.mxu0 %v724_v0 }
  0x70   :  { %565 = vmatpush3.bf16.msra.mxu0 %v605_v44 }
 0x113   :  { %v193_v19 = vpop.f32.mrf.mxu0 }
 0x114   :  { %v194_v21 = vadd.f32 %v456_v18, %v193_v19 }
 0x115   :  { %v528_v20 = vpop.f32.mrf.mxu0 }
 0x116   :  { %v200_v25 = vmax.f32 %v194_v21, 0.0 }
 0x117   :  { %v196_v22 = vpop.f32.mrf.mxu0 }
 0x118   :  { %v197_v23 = vadd.f32 %v456_v18, %v196_v22 }
 0x119   :  { %v529_v24 = vpop.f32.mrf.mxu0 }
 0x11a   :  { %v201_v26 = vmax.f32 %v197_v23, 0.0 }
 0x11c   :  { %v202_v27 = vpack.c.bf16 %v201_v26, %v200_v25 }
 0x11e   :  { %547 = vmatmul.mubr.bf16.vlgmr.msra.gmra.mxu1 %v202_v27 }
 0x1de   :  { %v308_v31 = vpop.f32.mrf.mxu1 }
 0x1df   :  { %v309_v32 = vadd.f32 %v466_v30, %v308_v31 }
 0x1e0   :  { %v548_v33 = vpop.f32.mrf.mxu1 }
 0x1e1   :  { %v315_v34 = vmul.f32 %v309_v32, %v309_v32 }
 0x1e2   :  { %v311_v35 = vpop.f32.mrf.mxu1 }
 0x1e3   :  { %v312_v36 = vadd.f32 %v466_v30, %v311_v35  ;;  %317 = vadd.xlane.f32.xlu0 %v315_v34 }
 0x1e4   :  { %v549_v37 = vpop.f32.mrf.mxu1 }
 0x1e5   :  { %v316_v38 = vmul.f32 %v312_v36, %v312_v36 }
 0x1e7   :  { %319 = vadd.xlane.f32.xlu0 %v316_v38 }
 0x26c   :  { %v318_v45 = vpop.xlane.xlu0 %317 }
 0x26d   :  { %v321_v46 = vmax.f32 %v318_v45, 1e-24 }
 0x26f   :  { %606 = vrsqrt.f32 %v321_v46 }
 0x270   :  { %v320_v47 = vpop.xlane.xlu0 %319 }
 0x271   :  { %v322_v48 = vmax.f32 %v320_v47, 1e-24 }
 0x273   :  { %608 = vrsqrt.f32 %v322_v48 }
 0x27c   :  { %v607_v49 = vpop.eup %606 }
 0x27d   :  { %v325_v50 = vmul.f32 50.0, %v607_v49 }
 0x27f   :  { %v327_v53 = vmul.f32 %v325_v50, %v309_v32 }
 0x280   :  { %v609_v51 = vpop.eup %608 }
 0x281   :  { %v326_v52 = vmul.f32 50.0, %v609_v51 }
 0x283   :  { %v328_v54 = vmul.f32 %v326_v52, %v312_v36 }
 0x285   :  { %v329_v55 = vpack.c.bf16 %v328_v54, %v327_v53 }
 0x287   :  { %567 = vmatmul.mubr.bf16.vlgmr.msra.gmra.mxu0 %v329_v55 }
 0x347   :  { %v428_v56 = vpop.f32.mrf.mxu0 }
 0x348   :  { %435 = vst [vmem:[#allocation10] sm:$0xff] %v428_v56 }
 0x349   :  { %v568_v57 = vpop.f32.mrf.mxu0 }
 0x34b   :  { %v431_v58 = vpop.f32.mrf.mxu0 }
 0x34c   :  { %436 = vst [vmem:[#allocation10 + $0x8] sm:$0xff] %v431_v58 }
 0x34d   :  { %v569_v59 = vpop.f32.mrf.mxu0 }
 0x34e   :  { %701 = shalt.err (!%p698_p10)
}
 0x34f   :  { %s727_s20 = smov 128   ;;  %s728_s21 = smov 8  }
 0x350   :  { %448 = dma.vmem_to_hbm [thread:$0]  %s443_s18, 256, %s833_s6, [#allocation4], %s727_s20, %s727_s20, %s728_s21  }
 0x351   :  { %716 = dma.done.wait [#allocation4], 256  }
 0x352   :  { %717 = vsyncadd [#allocation4], 4294967040 }
 0x353   :  { %452 = vsyncpa [#allocation3], 1 }
 0x354   :  { %453 = vsyncpa [#allocation6], 1 }
 0x355   :  { %454 = vsyncpa [#allocation9], 1 }
 0x356   :  { %455 = vsyncpa [#allocation4], 1 }

</bundles_post_ra>
